<compile_context>
chip_gen: v5e
topology: v5e:2x2
jax: 0.10.0
libtpu: 0.0.40
codegen_flags: <defaults>
</compile_context>

<pallas_src>
import functools

import jax
import jax.numpy as jnp
from jax import lax
from jax.experimental import pallas as pl
from jax.experimental.pallas import tpu as pltpu


# stride-2 tap -> (input parity plane, offset relative to the output index),
# identical tables for rows (kh) and columns (kw):
#   k=0 -> odd-parity plane, offset -1 ; k=1 -> even plane, offset 0 ;
#   k=2 -> odd plane, offset 0.
_S2_TAP = {0: (1, -1), 1: (0, 0), 2: (1, 0)}


def _lane_roll(x, shift):
    """Circular shift along the last (lane) axis by a static amount.

    out[..., m] = x[..., (m - shift) mod M].  Wrapped positions are always
    zeroed afterwards by the halo mask, so circular semantics are safe.
    (Plain slice+concat: robust for any dtype; pltpu.roll would move this to
    the XLU if it ever shows up as a bottleneck.)
    """
    if shift == 0:
        return x
    return jnp.concatenate([x[:, -shift:], x[:, :-shift]], axis=1)


def _down_block_kernel(a1_ref, a2_ref, xs_ref, m1_ref, m2_ref,
                       w1_ref, b1_ref, w2_ref, b2_ref, out_ref, *, W2):
    """Fused PReLU -> conv3x3(s2,p1) -> PReLU -> conv3x3(s1,p1) for one image.

    a1_ref, a2_ref : (1,1) f32 SMEM      PReLU slopes (scalar, PyTorch default)
    xs_ref         : (1,4,Cin,M)  f32    2x2 space-to-depth input, flat spatial on lanes
    m1_ref, m2_ref : (9,M) f32           per-tap halo masks (1=valid, 0=padding)
    w1_ref         : (Cout,9*Cin) mm     conv1 weights, taps folded into K
    b1_ref         : (Cout,1) f32
    w2_ref         : (Cout,9*Cout) mm    conv2 weights, taps folded into K
    b2_ref         : (Cout,1) f32
    out_ref        : (1,Cout,M)          NCHW output, spatial flattened on lanes
    """
    f32 = jnp.float32
    mm = w1_ref.dtype                                  # MXU feed dtype (bf16/f32)
    _, _, Cin, M = xs_ref.shape
    Cout = b1_ref.shape[0]

    a1 = a1_ref[0, 0]
    a2 = a2_ref[0, 0]

    # ---- stage 1: PReLU(x) on the four stride-2 parity planes (exact f32) ---
    planes = []
    for p in range(4):
        xv = xs_ref[0, p].astype(f32)                  # (Cin, M)
        planes.append(jnp.where(xv > 0, xv, a1 * xv))

    # ---- conv1 (3x3 / stride 2 / pad 1): ONE matmul with K = 9*Cin ----------
    taps = []
    for kh in range(3):
        pr, rofs = _S2_TAP[kh]
        for kw in range(3):
            pc, cofs = _S2_TAP[kw]
            t = kh * 3 + kw
            shift = (-(rofs * W2 + cofs)) % M
            src = _lane_roll(planes[2 * pr + pc], shift)
            valid = m1_ref[t:t + 1, :] != 0.0          # (1, M) halo mask
            taps.append(jnp.where(valid, src, 0.0))
    slab1 = jnp.concatenate(taps, axis=0).astype(mm)   # (9*Cin, M) im2col slab
    y = jnp.dot(w1_ref[...], slab1, preferred_element_type=f32)   # (Cout, M)
    y = y + b1_ref[...]                                # + (Cout, 1) bias

    # ---- stage 2: PReLU(y) (f32) ---------------------------------------------
    py = jnp.where(y > 0, y, a2 * y)                   # (Cout, M)

    # ---- conv2 (3x3 / stride 1 / pad 1): ONE matmul with K = 9*Cout ----------
    taps = []
    for kh in range(3):
        for kw in range(3):
            t = kh * 3 + kw
            shift = (-((kh - 1) * W2 + (kw - 1))) % M
            src = _lane_roll(py, shift)
            valid = m2_ref[t:t + 1, :] != 0.0
            taps.append(jnp.where(valid, src, 0.0))
    slab2 = jnp.concatenate(taps, axis=0).astype(mm)   # (9*Cout, M)
    z = jnp.dot(w2_ref[...], slab2, preferred_element_type=f32)   # (Cout, M)
    z = z + b2_ref[...]

    # Result is already (Cout, M): lane-dense store, no transpose epilogue.
    out_ref[0] = z.astype(out_ref.dtype)


def _vmem_limit_bytes():
    """Generation-aware scoped-VMEM limit (~75% of physical capacity)."""
    try:
        cap = int(pltpu.get_tpu_info().vmem_capacity_bytes)
    except Exception:
        cap = 64 * 1024 * 1024
    return max(32 * 1024 * 1024, (cap * 3) // 4)


# ------------------------------ wrapper --------------------------------------
def down_sampling_block(x_nchw, params, *, matmul_dtype=jnp.bfloat16,
                        out_dtype=None):
    """Forward pass of DownSamplingBlock.  x: (N,Cin,H,W) -> (N,Cout,H/2,W/2)."""
    a1, w1, b1, a2, w2, b2 = params
    N, Cin, H, W = x_nchw.shape
    Cout = w1.shape[0]
    if H % 2 or W % 2:
        # TODO(synk): odd spatial sizes need an extra bottom/right halo tap set.
        raise ValueError("down_sampling_block requires even H and W")
    H2, W2 = H // 2, W // 2
    M = H2 * W2
    out_dtype = x_nchw.dtype if out_dtype is None else out_dtype

    # One layout pass (reads/writes x once): NCHW -> 2x2 space-to-depth with
    # channels on sublanes and flat spatial on lanes:
    #   xs[n, 2*pr+pc, c, i*W2+j] = x[n, c, 2i+pr, 2j+pc]
    # Kept in x's dtype (f32) so the in-kernel PReLU is exact-f32; only the
    # MXU operands are cast to matmul_dtype inside the kernel.
    xs = (x_nchw.reshape(N, Cin, H2, 2, W2, 2)
                .transpose(0, 3, 5, 1, 2, 4)
                .reshape(N, 4, Cin, M))

    # Per-tap halo masks over the flat output index (1=valid, 0=zero padding).
    row = jnp.repeat(jnp.arange(H2, dtype=jnp.int32), W2)   # (M,)
    col = jnp.tile(jnp.arange(W2, dtype=jnp.int32), H2)     # (M,)
    m1, m2 = [], []
    for kh in range(3):
        _, rofs = _S2_TAP[kh]
        for kw in range(3):
            _, cofs = _S2_TAP[kw]
            m1.append((row + rofs >= 0) & (col + cofs >= 0))
            dr, dc = kh - 1, kw - 1
            m2.append((row + dr >= 0) & (row + dr < H2) &
                      (col + dc >= 0) & (col + dc < W2))
    mask1 = jnp.stack(m1).astype(jnp.float32)                # (9, M)
    mask2 = jnp.stack(m2).astype(jnp.float32)                # (9, M)

    # Weights with taps folded into the contraction dim (tap-major, ch-minor):
    #   w1t[co, (kh*3+kw)*Cin + ci] = w1[co, ci, kh, kw]
    w1t = jnp.transpose(w1, (0, 2, 3, 1)).reshape(Cout, 9 * Cin).astype(matmul_dtype)
    w2t = jnp.transpose(w2, (0, 2, 3, 1)).reshape(Cout, 9 * Cout).astype(matmul_dtype)
    b1r = jnp.reshape(b1, (Cout, 1)).astype(jnp.float32)
    b2r = jnp.reshape(b2, (Cout, 1)).astype(jnp.float32)
    a1r = jnp.reshape(a1, (1, 1)).astype(jnp.float32)
    a2r = jnp.reshape(a2, (1, 1)).astype(jnp.float32)

    smem = pltpu.MemorySpace.SMEM
    kernel = functools.partial(_down_block_kernel, W2=W2)
    out = pl.pallas_call(
        kernel,
        out_shape=jax.ShapeDtypeStruct((N, Cout, M), out_dtype),
        grid=(N,),
        in_specs=[
            pl.BlockSpec((1, 1), lambda b: (0, 0), memory_space=smem),
            pl.BlockSpec((1, 1), lambda b: (0, 0), memory_space=smem),
            pl.BlockSpec((1, 4, Cin, M), lambda b: (b, 0, 0, 0)),
            # Constant index maps: masks / weights / biases are DMA'd once and
            # stay VMEM-resident across the batch grid.
            pl.BlockSpec((9, M), lambda b: (0, 0)),
            pl.BlockSpec((9, M), lambda b: (0, 0)),
            pl.BlockSpec((Cout, 9 * Cin), lambda b: (0, 0)),
            pl.BlockSpec((Cout, 1), lambda b: (0, 0)),
            pl.BlockSpec((Cout, 9 * Cout), lambda b: (0, 0)),
            pl.BlockSpec((Cout, 1), lambda b: (0, 0)),
        ],
        out_specs=pl.BlockSpec((1, Cout, M), lambda b: (b, 0, 0)),
        compiler_params=pltpu.CompilerParams(
            dimension_semantics=("parallel",),          # megacore sharding on v7x
            vmem_limit_bytes=_vmem_limit_bytes(),       # 96 MiB v5e/v6e, 48 MiB v7x
        ),
    )(a1r, a2r, xs, mask1, mask2, w1t, b1r, w2t, b2r)

    # Metadata-only reshape back to NCHW.
    return out.reshape(N, Cout, H2, W2)


# --------------------------- parameter init ----------------------------------
def init_params(key, in_ch, out_ch):
    k1, k2, k3, k4 = jax.random.split(key, 4)
    a1 = jnp.array(0.25, jnp.float32)                  # nn.PReLU() default init
    w1 = 0.1 * jax.random.normal(k1, (out_ch, in_ch, 3, 3), jnp.float32)
    b1 = 0.1 * jax.random.normal(k2, (out_ch,), jnp.float32)
    a2 = jnp.array(0.25, jnp.float32)
    w2 = 0.1 * jax.random.normal(k3, (out_ch, out_ch, 3, 3), jnp.float32)
    b2 = 0.1 * jax.random.normal(k4, (out_ch,), jnp.float32)
    return (a1, w1, b1, a2, w2, b2)


# --------------------------- pure-JAX reference -------------------------------
def ref_forward(x_nchw, params):
    a1, w1, b1, a2, w2, b2 = params
    dn = ('NCHW', 'OIHW', 'NCHW')
    x = jnp.where(x_nchw > 0, x_nchw, a1 * x_nchw)
    y = lax.conv_general_dilated(x, w1, (2, 2), ((1, 1), (1, 1)),
                                 dimension_numbers=dn,
                                 precision=lax.Precision.HIGHEST)
    y = y + b1[None, :, None, None]
    y = jnp.where(y > 0, y, a2 * y)
    z = lax.conv_general_dilated(y, w2, (1, 1), ((1, 1), (1, 1)),
                                 dimension_numbers=dn,
                                 precision=lax.Precision.HIGHEST)
    z = z + b2[None, :, None, None]
    return z


if __name__ == "__main__":
    key = jax.random.PRNGKey(0)
    kx, kp = jax.random.split(key)

    N, in_ch, out_ch, H, W = 2, 4, 8, 16, 16
    x = jax.random.normal(kx, (N, in_ch, H, W), jnp.float32)
    params = init_params(kp, in_ch, out_ch)

    ref = jax.block_until_ready(ref_forward(x, params))

    # Exact path: f32 MXU operands.
    out_f32 = jax.block_until_ready(
        down_sampling_block(x, params, matmul_dtype=jnp.float32))
    assert out_f32.shape == (N, out_ch, H // 2, W // 2), out_f32.shape
    assert jnp.allclose(out_f32, ref, atol=1e-4, rtol=1e-4), \
        float(jnp.max(jnp.abs(out_f32 - ref)))

    # Default path: bf16 MXU feed (all generations), f32 PReLU + accumulation.
    out = jax.block_until_ready(down_sampling_block(x, params))
    assert out.shape == (N, out_ch, H // 2, W // 2), out.shape
    assert jnp.allclose(out, ref, atol=5e-2, rtol=5e-2), \
        float(jnp.max(jnp.abs(out - ref)))

    print("KERNEL_OK")
</pallas_src>

<mosaic_0001>
module attributes {stable_mosaic.version = 11 : i64} {
  func.func @_down_block_kernel(%arg0: i32, %arg1: memref<1x1xf32, #tpu.memory_space<smem>>, %arg2: memref<1x1xf32, #tpu.memory_space<smem>>, %arg3: memref<1x4x4x64xf32, #tpu.memory_space<vmem>>, %arg4: memref<9x64xf32, #tpu.memory_space<vmem>>, %arg5: memref<9x64xf32, #tpu.memory_space<vmem>>, %arg6: memref<8x36xf32, #tpu.memory_space<vmem>>, %arg7: memref<8x1xf32, #tpu.memory_space<vmem>>, %arg8: memref<8x72xf32, #tpu.memory_space<vmem>>, %arg9: memref<8x1xf32, #tpu.memory_space<vmem>>, %arg10: memref<1x8x64xf32, #tpu.memory_space<vmem>>) attributes {dimension_semantics = [#tpu.dimension_semantics<parallel>], iteration_bounds = array<i64: 2>, scalar_prefetch = 0 : i64, scratch_operands = 0 : i64, tpu.core_type = #tpu.core_type<tc>, window_params = [{transform_indices = @transform_0, window_bounds = array<i64: 1, 1>}, {transform_indices = @transform_1, window_bounds = array<i64: 1, 1>}, {transform_indices = @transform_2, window_bounds = array<i64: 1, 4, 4, 64>}, {pipeline_mode = #tpu.pipeline_mode<synchronous>, transform_indices = @transform_3, window_bounds = array<i64: 9, 64>}, {pipeline_mode = #tpu.pipeline_mode<synchronous>, transform_indices = @transform_4, window_bounds = array<i64: 9, 64>}, {pipeline_mode = #tpu.pipeline_mode<synchronous>, transform_indices = @transform_5, window_bounds = array<i64: 8, 36>}, {pipeline_mode = #tpu.pipeline_mode<synchronous>, transform_indices = @transform_6, window_bounds = array<i64: 8, 1>}, {pipeline_mode = #tpu.pipeline_mode<synchronous>, transform_indices = @transform_7, window_bounds = array<i64: 8, 72>}, {pipeline_mode = #tpu.pipeline_mode<synchronous>, transform_indices = @transform_8, window_bounds = array<i64: 8, 1>}, {transform_indices = @transform_9, window_bounds = array<i64: 1, 8, 64>}]} {
    %c0 = arith.constant 0 : index
    %c0_0 = arith.constant 0 : index
    %0 = memref.load %arg1[%c0, %c0_0] : memref<1x1xf32, #tpu.memory_space<smem>>
    %c0_1 = arith.constant 0 : index
    %c0_2 = arith.constant 0 : index
    %1 = memref.load %arg2[%c0_1, %c0_2] : memref<1x1xf32, #tpu.memory_space<smem>>
    %c0_3 = arith.constant 0 : index
    %c0_4 = arith.constant 0 : index
    %c0_5 = arith.constant 0 : index
    %c0_6 = arith.constant 0 : index
    %2 = vector.load %arg3[%c0_3, %c0_4, %c0_5, %c0_6] : memref<1x4x4x64xf32, #tpu.memory_space<vmem>>, vector<1x1x4x64xf32>
    %3 = vector.shape_cast %2 : vector<1x1x4x64xf32> to vector<4x64xf32>
    %cst = arith.constant 0.000000e+00 : f32
    %4 = vector.broadcast %cst : f32 to vector<4x64xf32>
    %5 = arith.cmpf ogt, %3, %4 : vector<4x64xf32>
    %6 = vector.broadcast %0 : f32 to vector<4x64xf32>
    %7 = arith.mulf %6, %3 : vector<4x64xf32>
    %8 = arith.select %5, %3, %7 : vector<4x64xi1>, vector<4x64xf32>
    %c0_7 = arith.constant 0 : index
    %c1 = arith.constant 1 : index
    %c0_8 = arith.constant 0 : index
    %c0_9 = arith.constant 0 : index
    %9 = vector.load %arg3[%c0_7, %c1, %c0_8, %c0_9] : memref<1x4x4x64xf32, #tpu.memory_space<vmem>>, vector<1x1x4x64xf32>
    %10 = vector.shape_cast %9 : vector<1x1x4x64xf32> to vector<4x64xf32>
    %cst_10 = arith.constant 0.000000e+00 : f32
    %11 = vector.broadcast %cst_10 : f32 to vector<4x64xf32>
    %12 = arith.cmpf ogt, %10, %11 : vector<4x64xf32>
    %13 = vector.broadcast %0 : f32 to vector<4x64xf32>
    %14 = arith.mulf %13, %10 : vector<4x64xf32>
    %15 = arith.select %12, %10, %14 : vector<4x64xi1>, vector<4x64xf32>
    %c0_11 = arith.constant 0 : index
    %c2 = arith.constant 2 : index
    %c0_12 = arith.constant 0 : index
    %c0_13 = arith.constant 0 : index
    %16 = vector.load %arg3[%c0_11, %c2, %c0_12, %c0_13] : memref<1x4x4x64xf32, #tpu.memory_space<vmem>>, vector<1x1x4x64xf32>
    %17 = vector.shape_cast %16 : vector<1x1x4x64xf32> to vector<4x64xf32>
    %cst_14 = arith.constant 0.000000e+00 : f32
    %18 = vector.broadcast %cst_14 : f32 to vector<4x64xf32>
    %19 = arith.cmpf ogt, %17, %18 : vector<4x64xf32>
    %20 = vector.broadcast %0 : f32 to vector<4x64xf32>
    %21 = arith.mulf %20, %17 : vector<4x64xf32>
    %22 = arith.select %19, %17, %21 : vector<4x64xi1>, vector<4x64xf32>
    %c0_15 = arith.constant 0 : index
    %c3 = arith.constant 3 : index
    %c0_16 = arith.constant 0 : index
    %c0_17 = arith.constant 0 : index
    %23 = vector.load %arg3[%c0_15, %c3, %c0_16, %c0_17] : memref<1x4x4x64xf32, #tpu.memory_space<vmem>>, vector<1x1x4x64xf32>
    %24 = vector.shape_cast %23 : vector<1x1x4x64xf32> to vector<4x64xf32>
    %cst_18 = arith.constant 0.000000e+00 : f32
    %25 = vector.broadcast %cst_18 : f32 to vector<4x64xf32>
    %26 = arith.cmpf ogt, %24, %25 : vector<4x64xf32>
    %27 = vector.broadcast %0 : f32 to vector<4x64xf32>
    %28 = arith.mulf %27, %24 : vector<4x64xf32>
    %29 = arith.select %26, %24, %28 : vector<4x64xi1>, vector<4x64xf32>
    %30 = vector.extract_strided_slice %29 {offsets = [0, 55], sizes = [4, 9], strides = [1, 1]} : vector<4x64xf32> to vector<4x9xf32>
    %31 = vector.extract_strided_slice %29 {offsets = [0, 0], sizes = [4, 55], strides = [1, 1]} : vector<4x64xf32> to vector<4x55xf32>
    %32 = tpu.concatenate %30, %31 in 1 : vector<4x9xf32>, vector<4x55xf32> -> vector<4x64xf32>
    %c0_19 = arith.constant 0 : index
    %c0_20 = arith.constant 0 : index
    %33 = vector.load %arg4[%c0_19, %c0_20] : memref<9x64xf32, #tpu.memory_space<vmem>>, vector<1x64xf32>
    %cst_21 = arith.constant 0.000000e+00 : f32
    %34 = vector.broadcast %cst_21 : f32 to vector<1x64xf32>
    %35 = arith.cmpf one, %33, %34 : vector<1x64xf32>
    %cst_22 = arith.constant 0.000000e+00 : f32
    %36 = vector.shape_cast %35 : vector<1x64xi1> to vector<1x64xi1>
    %37 = vector.broadcast %36 : vector<1x64xi1> to vector<4x64xi1>
    %38 = vector.broadcast %cst_22 : f32 to vector<4x64xf32>
    %39 = arith.select %37, %32, %38 : vector<4x64xi1>, vector<4x64xf32>
    %40 = vector.extract_strided_slice %22 {offsets = [0, 56], sizes = [4, 8], strides = [1, 1]} : vector<4x64xf32> to vector<4x8xf32>
    %41 = vector.extract_strided_slice %22 {offsets = [0, 0], sizes = [4, 56], strides = [1, 1]} : vector<4x64xf32> to vector<4x56xf32>
    %42 = tpu.concatenate %40, %41 in 1 : vector<4x8xf32>, vector<4x56xf32> -> vector<4x64xf32>
    %c1_23 = arith.constant 1 : index
    %c0_24 = arith.constant 0 : index
    %43 = vector.load %arg4[%c1_23, %c0_24] : memref<9x64xf32, #tpu.memory_space<vmem>>, vector<1x64xf32>
    %cst_25 = arith.constant 0.000000e+00 : f32
    %44 = vector.broadcast %cst_25 : f32 to vector<1x64xf32>
    %45 = arith.cmpf one, %43, %44 : vector<1x64xf32>
    %cst_26 = arith.constant 0.000000e+00 : f32
    %46 = vector.shape_cast %45 : vector<1x64xi1> to vector<1x64xi1>
    %47 = vector.broadcast %46 : vector<1x64xi1> to vector<4x64xi1>
    %48 = vector.broadcast %cst_26 : f32 to vector<4x64xf32>
    %49 = arith.select %47, %42, %48 : vector<4x64xi1>, vector<4x64xf32>
    %50 = vector.extract_strided_slice %29 {offsets = [0, 56], sizes = [4, 8], strides = [1, 1]} : vector<4x64xf32> to vector<4x8xf32>
    %51 = vector.extract_strided_slice %29 {offsets = [0, 0], sizes = [4, 56], strides = [1, 1]} : vector<4x64xf32> to vector<4x56xf32>
    %52 = tpu.concatenate %50, %51 in 1 : vector<4x8xf32>, vector<4x56xf32> -> vector<4x64xf32>
    %c2_27 = arith.constant 2 : index
    %c0_28 = arith.constant 0 : index
    %53 = vector.load %arg4[%c2_27, %c0_28] : memref<9x64xf32, #tpu.memory_space<vmem>>, vector<1x64xf32>
    %cst_29 = arith.constant 0.000000e+00 : f32
    %54 = vector.broadcast %cst_29 : f32 to vector<1x64xf32>
    %55 = arith.cmpf one, %53, %54 : vector<1x64xf32>
    %cst_30 = arith.constant 0.000000e+00 : f32
    %56 = vector.shape_cast %55 : vector<1x64xi1> to vector<1x64xi1>
    %57 = vector.broadcast %56 : vector<1x64xi1> to vector<4x64xi1>
    %58 = vector.broadcast %cst_30 : f32 to vector<4x64xf32>
    %59 = arith.select %57, %52, %58 : vector<4x64xi1>, vector<4x64xf32>
    %60 = vector.extract_strided_slice %15 {offsets = [0, 63], sizes = [4, 1], strides = [1, 1]} : vector<4x64xf32> to vector<4x1xf32>
    %61 = vector.extract_strided_slice %15 {offsets = [0, 0], sizes = [4, 63], strides = [1, 1]} : vector<4x64xf32> to vector<4x63xf32>
    %62 = tpu.concatenate %60, %61 in 1 : vector<4x1xf32>, vector<4x63xf32> -> vector<4x64xf32>
    %c3_31 = arith.constant 3 : index
    %c0_32 = arith.constant 0 : index
    %63 = vector.load %arg4[%c3_31, %c0_32] : memref<9x64xf32, #tpu.memory_space<vmem>>, vector<1x64xf32>
    %cst_33 = arith.constant 0.000000e+00 : f32
    %64 = vector.broadcast %cst_33 : f32 to vector<1x64xf32>
    %65 = arith.cmpf one, %63, %64 : vector<1x64xf32>
    %cst_34 = arith.constant 0.000000e+00 : f32
    %66 = vector.shape_cast %65 : vector<1x64xi1> to vector<1x64xi1>
    %67 = vector.broadcast %66 : vector<1x64xi1> to vector<4x64xi1>
    %68 = vector.broadcast %cst_34 : f32 to vector<4x64xf32>
    %69 = arith.select %67, %62, %68 : vector<4x64xi1>, vector<4x64xf32>
    %c4 = arith.constant 4 : index
    %c0_35 = arith.constant 0 : index
    %70 = vector.load %arg4[%c4, %c0_35] : memref<9x64xf32, #tpu.memory_space<vmem>>, vector<1x64xf32>
    %cst_36 = arith.constant 0.000000e+00 : f32
    %71 = vector.broadcast %cst_36 : f32 to vector<1x64xf32>
    %72 = arith.cmpf one, %70, %71 : vector<1x64xf32>
    %cst_37 = arith.constant 0.000000e+00 : f32
    %73 = vector.shape_cast %72 : vector<1x64xi1> to vector<1x64xi1>
    %74 = vector.broadcast %73 : vector<1x64xi1> to vector<4x64xi1>
    %75 = vector.broadcast %cst_37 : f32 to vector<4x64xf32>
    %76 = arith.select %74, %8, %75 : vector<4x64xi1>, vector<4x64xf32>
    %c5 = arith.constant 5 : index
    %c0_38 = arith.constant 0 : index
    %77 = vector.load %arg4[%c5, %c0_38] : memref<9x64xf32, #tpu.memory_space<vmem>>, vector<1x64xf32>
    %cst_39 = arith.constant 0.000000e+00 : f32
    %78 = vector.broadcast %cst_39 : f32 to vector<1x64xf32>
    %79 = arith.cmpf one, %77, %78 : vector<1x64xf32>
    %cst_40 = arith.constant 0.000000e+00 : f32
    %80 = vector.shape_cast %79 : vector<1x64xi1> to vector<1x64xi1>
    %81 = vector.broadcast %80 : vector<1x64xi1> to vector<4x64xi1>
    %82 = vector.broadcast %cst_40 : f32 to vector<4x64xf32>
    %83 = arith.select %81, %15, %82 : vector<4x64xi1>, vector<4x64xf32>
    %84 = vector.extract_strided_slice %29 {offsets = [0, 63], sizes = [4, 1], strides = [1, 1]} : vector<4x64xf32> to vector<4x1xf32>
    %85 = vector.extract_strided_slice %29 {offsets = [0, 0], sizes = [4, 63], strides = [1, 1]} : vector<4x64xf32> to vector<4x63xf32>
    %86 = tpu.concatenate %84, %85 in 1 : vector<4x1xf32>, vector<4x63xf32> -> vector<4x64xf32>
    %c6 = arith.constant 6 : index
    %c0_41 = arith.constant 0 : index
    %87 = vector.load %arg4[%c6, %c0_41] : memref<9x64xf32, #tpu.memory_space<vmem>>, vector<1x64xf32>
    %cst_42 = arith.constant 0.000000e+00 : f32
    %88 = vector.broadcast %cst_42 : f32 to vector<1x64xf32>
    %89 = arith.cmpf one, %87, %88 : vector<1x64xf32>
    %cst_43 = arith.constant 0.000000e+00 : f32
    %90 = vector.shape_cast %89 : vector<1x64xi1> to vector<1x64xi1>
    %91 = vector.broadcast %90 : vector<1x64xi1> to vector<4x64xi1>
    %92 = vector.broadcast %cst_43 : f32 to vector<4x64xf32>
    %93 = arith.select %91, %86, %92 : vector<4x64xi1>, vector<4x64xf32>
    %c7 = arith.constant 7 : index
    %c0_44 = arith.constant 0 : index
    %94 = vector.load %arg4[%c7, %c0_44] : memref<9x64xf32, #tpu.memory_space<vmem>>, vector<1x64xf32>
    %cst_45 = arith.constant 0.000000e+00 : f32
    %95 = vector.broadcast %cst_45 : f32 to vector<1x64xf32>
    %96 = arith.cmpf one, %94, %95 : vector<1x64xf32>
    %cst_46 = arith.constant 0.000000e+00 : f32
    %97 = vector.shape_cast %96 : vector<1x64xi1> to vector<1x64xi1>
    %98 = vector.broadcast %97 : vector<1x64xi1> to vector<4x64xi1>
    %99 = vector.broadcast %cst_46 : f32 to vector<4x64xf32>
    %100 = arith.select %98, %22, %99 : vector<4x64xi1>, vector<4x64xf32>
    %c8 = arith.constant 8 : index
    %c0_47 = arith.constant 0 : index
    %101 = vector.load %arg4[%c8, %c0_47] : memref<9x64xf32, #tpu.memory_space<vmem>>, vector<1x64xf32>
    %cst_48 = arith.constant 0.000000e+00 : f32
    %102 = vector.broadcast %cst_48 : f32 to vector<1x64xf32>
    %103 = arith.cmpf one, %101, %102 : vector<1x64xf32>
    %cst_49 = arith.constant 0.000000e+00 : f32
    %104 = vector.shape_cast %103 : vector<1x64xi1> to vector<1x64xi1>
    %105 = vector.broadcast %104 : vector<1x64xi1> to vector<4x64xi1>
    %106 = vector.broadcast %cst_49 : f32 to vector<4x64xf32>
    %107 = arith.select %105, %29, %106 : vector<4x64xi1>, vector<4x64xf32>
    %108 = tpu.concatenate %39, %49, %59, %69, %76, %83, %93, %100, %107 in 0 : vector<4x64xf32>, vector<4x64xf32>, vector<4x64xf32>, vector<4x64xf32>, vector<4x64xf32>, vector<4x64xf32>, vector<4x64xf32>, vector<4x64xf32>, vector<4x64xf32> -> vector<36x64xf32>
    %c0_50 = arith.constant 0 : index
    %c0_51 = arith.constant 0 : index
    %109 = vector.load %arg6[%c0_50, %c0_51] : memref<8x36xf32, #tpu.memory_space<vmem>>, vector<8x36xf32>
    %cst_52 = arith.constant dense<0.000000e+00> : vector<8x64xf32>
    %110 = tpu.matmul %109, %108, %cst_52 {dimension_numbers = #tpu.dot_dimension_numbers<[1], [0], [0], [1], [0, 0, 1, 1], [], []>} : vector<8x36xf32>, vector<36x64xf32>, vector<8x64xf32> -> vector<8x64xf32>
    %c0_53 = arith.constant 0 : index
    %c0_54 = arith.constant 0 : index
    %111 = vector.load %arg7[%c0_53, %c0_54] : memref<8x1xf32, #tpu.memory_space<vmem>>, vector<8x1xf32>
    %112 = vector.broadcast %111 : vector<8x1xf32> to vector<8x64xf32>
    %113 = arith.addf %110, %112 : vector<8x64xf32>
    %cst_55 = arith.constant 0.000000e+00 : f32
    %114 = vector.broadcast %cst_55 : f32 to vector<8x64xf32>
    %115 = arith.cmpf ogt, %113, %114 : vector<8x64xf32>
    %116 = vector.broadcast %1 : f32 to vector<8x64xf32>
    %117 = arith.mulf %116, %113 : vector<8x64xf32>
    %118 = arith.select %115, %113, %117 : vector<8x64xi1>, vector<8x64xf32>
    %119 = vector.extract_strided_slice %118 {offsets = [0, 55], sizes = [8, 9], strides = [1, 1]} : vector<8x64xf32> to vector<8x9xf32>
    %120 = vector.extract_strided_slice %118 {offsets = [0, 0], sizes = [8, 55], strides = [1, 1]} : vector<8x64xf32> to vector<8x55xf32>
    %121 = tpu.concatenate %119, %120 in 1 : vector<8x9xf32>, vector<8x55xf32> -> vector<8x64xf32>
    %c0_56 = arith.constant 0 : index
    %c0_57 = arith.constant 0 : index
    %122 = vector.load %arg5[%c0_56, %c0_57] : memref<9x64xf32, #tpu.memory_space<vmem>>, vector<1x64xf32>
    %cst_58 = arith.constant 0.000000e+00 : f32
    %123 = vector.broadcast %cst_58 : f32 to vector<1x64xf32>
    %124 = arith.cmpf one, %122, %123 : vector<1x64xf32>
    %cst_59 = arith.constant 0.000000e+00 : f32
    %125 = vector.shape_cast %124 : vector<1x64xi1> to vector<1x64xi1>
    %126 = vector.broadcast %125 : vector<1x64xi1> to vector<8x64xi1>
    %127 = vector.broadcast %cst_59 : f32 to vector<8x64xf32>
    %128 = arith.select %126, %121, %127 : vector<8x64xi1>, vector<8x64xf32>
    %129 = vector.extract_strided_slice %118 {offsets = [0, 56], sizes = [8, 8], strides = [1, 1]} : vector<8x64xf32> to vector<8x8xf32>
    %130 = vector.extract_strided_slice %118 {offsets = [0, 0], sizes = [8, 56], strides = [1, 1]} : vector<8x64xf32> to vector<8x56xf32>
    %131 = tpu.concatenate %129, %130 in 1 : vector<8x8xf32>, vector<8x56xf32> -> vector<8x64xf32>
    %c1_60 = arith.constant 1 : index
    %c0_61 = arith.constant 0 : index
    %132 = vector.load %arg5[%c1_60, %c0_61] : memref<9x64xf32, #tpu.memory_space<vmem>>, vector<1x64xf32>
    %cst_62 = arith.constant 0.000000e+00 : f32
    %133 = vector.broadcast %cst_62 : f32 to vector<1x64xf32>
    %134 = arith.cmpf one, %132, %133 : vector<1x64xf32>
    %cst_63 = arith.constant 0.000000e+00 : f32
    %135 = vector.shape_cast %134 : vector<1x64xi1> to vector<1x64xi1>
    %136 = vector.broadcast %135 : vector<1x64xi1> to vector<8x64xi1>
    %137 = vector.broadcast %cst_63 : f32 to vector<8x64xf32>
    %138 = arith.select %136, %131, %137 : vector<8x64xi1>, vector<8x64xf32>
    %139 = vector.extract_strided_slice %118 {offsets = [0, 57], sizes = [8, 7], strides = [1, 1]} : vector<8x64xf32> to vector<8x7xf32>
    %140 = vector.extract_strided_slice %118 {offsets = [0, 0], sizes = [8, 57], strides = [1, 1]} : vector<8x64xf32> to vector<8x57xf32>
    %141 = tpu.concatenate %139, %140 in 1 : vector<8x7xf32>, vector<8x57xf32> -> vector<8x64xf32>
    %c2_64 = arith.constant 2 : index
    %c0_65 = arith.constant 0 : index
    %142 = vector.load %arg5[%c2_64, %c0_65] : memref<9x64xf32, #tpu.memory_space<vmem>>, vector<1x64xf32>
    %cst_66 = arith.constant 0.000000e+00 : f32
    %143 = vector.broadcast %cst_66 : f32 to vector<1x64xf32>
    %144 = arith.cmpf one, %142, %143 : vector<1x64xf32>
    %cst_67 = arith.constant 0.000000e+00 : f32
    %145 = vector.shape_cast %144 : vector<1x64xi1> to vector<1x64xi1>
    %146 = vector.broadcast %145 : vector<1x64xi1> to vector<8x64xi1>
    %147 = vector.broadcast %cst_67 : f32 to vector<8x64xf32>
    %148 = arith.select %146, %141, %147 : vector<8x64xi1>, vector<8x64xf32>
    %149 = vector.extract_strided_slice %118 {offsets = [0, 63], sizes = [8, 1], strides = [1, 1]} : vector<8x64xf32> to vector<8x1xf32>
    %150 = vector.extract_strided_slice %118 {offsets = [0, 0], sizes = [8, 63], strides = [1, 1]} : vector<8x64xf32> to vector<8x63xf32>
    %151 = tpu.concatenate %149, %150 in 1 : vector<8x1xf32>, vector<8x63xf32> -> vector<8x64xf32>
    %c3_68 = arith.constant 3 : index
    %c0_69 = arith.constant 0 : index
    %152 = vector.load %arg5[%c3_68, %c0_69] : memref<9x64xf32, #tpu.memory_space<vmem>>, vector<1x64xf32>
    %cst_70 = arith.constant 0.000000e+00 : f32
    %153 = vector.broadcast %cst_70 : f32 to vector<1x64xf32>
    %154 = arith.cmpf one, %152, %153 : vector<1x64xf32>
    %cst_71 = arith.constant 0.000000e+00 : f32
    %155 = vector.shape_cast %154 : vector<1x64xi1> to vector<1x64xi1>
    %156 = vector.broadcast %155 : vector<1x64xi1> to vector<8x64xi1>
    %157 = vector.broadcast %cst_71 : f32 to vector<8x64xf32>
    %158 = arith.select %156, %151, %157 : vector<8x64xi1>, vector<8x64xf32>
    %c4_72 = arith.constant 4 : index
    %c0_73 = arith.constant 0 : index
    %159 = vector.load %arg5[%c4_72, %c0_73] : memref<9x64xf32, #tpu.memory_space<vmem>>, vector<1x64xf32>
    %cst_74 = arith.constant 0.000000e+00 : f32
    %160 = vector.broadcast %cst_74 : f32 to vector<1x64xf32>
    %161 = arith.cmpf one, %159, %160 : vector<1x64xf32>
    %cst_75 = arith.constant 0.000000e+00 : f32
    %162 = vector.shape_cast %161 : vector<1x64xi1> to vector<1x64xi1>
    %163 = vector.broadcast %162 : vector<1x64xi1> to vector<8x64xi1>
    %164 = vector.broadcast %cst_75 : f32 to vector<8x64xf32>
    %165 = arith.select %163, %118, %164 : vector<8x64xi1>, vector<8x64xf32>
    %166 = vector.extract_strided_slice %118 {offsets = [0, 1], sizes = [8, 63], strides = [1, 1]} : vector<8x64xf32> to vector<8x63xf32>
    %167 = vector.extract_strided_slice %118 {offsets = [0, 0], sizes = [8, 1], strides = [1, 1]} : vector<8x64xf32> to vector<8x1xf32>
    %168 = tpu.concatenate %166, %167 in 1 : vector<8x63xf32>, vector<8x1xf32> -> vector<8x64xf32>
    %c5_76 = arith.constant 5 : index
    %c0_77 = arith.constant 0 : index
    %169 = vector.load %arg5[%c5_76, %c0_77] : memref<9x64xf32, #tpu.memory_space<vmem>>, vector<1x64xf32>
    %cst_78 = arith.constant 0.000000e+00 : f32
    %170 = vector.broadcast %cst_78 : f32 to vector<1x64xf32>
    %171 = arith.cmpf one, %169, %170 : vector<1x64xf32>
    %cst_79 = arith.constant 0.000000e+00 : f32
    %172 = vector.shape_cast %171 : vector<1x64xi1> to vector<1x64xi1>
    %173 = vector.broadcast %172 : vector<1x64xi1> to vector<8x64xi1>
    %174 = vector.broadcast %cst_79 : f32 to vector<8x64xf32>
    %175 = arith.select %173, %168, %174 : vector<8x64xi1>, vector<8x64xf32>
    %176 = vector.extract_strided_slice %118 {offsets = [0, 7], sizes = [8, 57], strides = [1, 1]} : vector<8x64xf32> to vector<8x57xf32>
    %177 = vector.extract_strided_slice %118 {offsets = [0, 0], sizes = [8, 7], strides = [1, 1]} : vector<8x64xf32> to vector<8x7xf32>
    %178 = tpu.concatenate %176, %177 in 1 : vector<8x57xf32>, vector<8x7xf32> -> vector<8x64xf32>
    %c6_80 = arith.constant 6 : index
    %c0_81 = arith.constant 0 : index
    %179 = vector.load %arg5[%c6_80, %c0_81] : memref<9x64xf32, #tpu.memory_space<vmem>>, vector<1x64xf32>
    %cst_82 = arith.constant 0.000000e+00 : f32
    %180 = vector.broadcast %cst_82 : f32 to vector<1x64xf32>
    %181 = arith.cmpf one, %179, %180 : vector<1x64xf32>
    %cst_83 = arith.constant 0.000000e+00 : f32
    %182 = vector.shape_cast %181 : vector<1x64xi1> to vector<1x64xi1>
    %183 = vector.broadcast %182 : vector<1x64xi1> to vector<8x64xi1>
    %184 = vector.broadcast %cst_83 : f32 to vector<8x64xf32>
    %185 = arith.select %183, %178, %184 : vector<8x64xi1>, vector<8x64xf32>
    %186 = vector.extract_strided_slice %118 {offsets = [0, 8], sizes = [8, 56], strides = [1, 1]} : vector<8x64xf32> to vector<8x56xf32>
    %187 = vector.extract_strided_slice %118 {offsets = [0, 0], sizes = [8, 8], strides = [1, 1]} : vector<8x64xf32> to vector<8x8xf32>
    %188 = tpu.concatenate %186, %187 in 1 : vector<8x56xf32>, vector<8x8xf32> -> vector<8x64xf32>
    %c7_84 = arith.constant 7 : index
    %c0_85 = arith.constant 0 : index
    %189 = vector.load %arg5[%c7_84, %c0_85] : memref<9x64xf32, #tpu.memory_space<vmem>>, vector<1x64xf32>
    %cst_86 = arith.constant 0.000000e+00 : f32
    %190 = vector.broadcast %cst_86 : f32 to vector<1x64xf32>
    %191 = arith.cmpf one, %189, %190 : vector<1x64xf32>
    %cst_87 = arith.constant 0.000000e+00 : f32
    %192 = vector.shape_cast %191 : vector<1x64xi1> to vector<1x64xi1>
    %193 = vector.broadcast %192 : vector<1x64xi1> to vector<8x64xi1>
    %194 = vector.broadcast %cst_87 : f32 to vector<8x64xf32>
    %195 = arith.select %193, %188, %194 : vector<8x64xi1>, vector<8x64xf32>
    %196 = vector.extract_strided_slice %118 {offsets = [0, 9], sizes = [8, 55], strides = [1, 1]} : vector<8x64xf32> to vector<8x55xf32>
    %197 = vector.extract_strided_slice %118 {offsets = [0, 0], sizes = [8, 9], strides = [1, 1]} : vector<8x64xf32> to vector<8x9xf32>
    %198 = tpu.concatenate %196, %197 in 1 : vector<8x55xf32>, vector<8x9xf32> -> vector<8x64xf32>
    %c8_88 = arith.constant 8 : index
    %c0_89 = arith.constant 0 : index
    %199 = vector.load %arg5[%c8_88, %c0_89] : memref<9x64xf32, #tpu.memory_space<vmem>>, vector<1x64xf32>
    %cst_90 = arith.constant 0.000000e+00 : f32
    %200 = vector.broadcast %cst_90 : f32 to vector<1x64xf32>
    %201 = arith.cmpf one, %199, %200 : vector<1x64xf32>
    %cst_91 = arith.constant 0.000000e+00 : f32
    %202 = vector.shape_cast %201 : vector<1x64xi1> to vector<1x64xi1>
    %203 = vector.broadcast %202 : vector<1x64xi1> to vector<8x64xi1>
    %204 = vector.broadcast %cst_91 : f32 to vector<8x64xf32>
    %205 = arith.select %203, %198, %204 : vector<8x64xi1>, vector<8x64xf32>
    %206 = tpu.concatenate %128, %138, %148, %158, %165, %175, %185, %195, %205 in 0 : vector<8x64xf32>, vector<8x64xf32>, vector<8x64xf32>, vector<8x64xf32>, vector<8x64xf32>, vector<8x64xf32>, vector<8x64xf32>, vector<8x64xf32>, vector<8x64xf32> -> vector<72x64xf32>
    %c0_92 = arith.constant 0 : index
    %c0_93 = arith.constant 0 : index
    %207 = vector.load %arg8[%c0_92, %c0_93] : memref<8x72xf32, #tpu.memory_space<vmem>>, vector<8x72xf32>
    %cst_94 = arith.constant dense<0.000000e+00> : vector<8x64xf32>
    %208 = tpu.matmul %207, %206, %cst_94 {dimension_numbers = #tpu.dot_dimension_numbers<[1], [0], [0], [1], [0, 0, 1, 1], [], []>} : vector<8x72xf32>, vector<72x64xf32>, vector<8x64xf32> -> vector<8x64xf32>
    %c0_95 = arith.constant 0 : index
    %c0_96 = arith.constant 0 : index
    %209 = vector.load %arg9[%c0_95, %c0_96] : memref<8x1xf32, #tpu.memory_space<vmem>>, vector<8x1xf32>
    %210 = vector.broadcast %209 : vector<8x1xf32> to vector<8x64xf32>
    %211 = arith.addf %208, %210 : vector<8x64xf32>
    %c0_97 = arith.constant 0 : index
    %c0_98 = arith.constant 0 : index
    %c0_99 = arith.constant 0 : index
    %212 = vector.load %arg10[%c0_97, %c0_98, %c0_99] : memref<1x8x64xf32, #tpu.memory_space<vmem>>, vector<1x8x64xf32>
    %213 = vector.shape_cast %212 : vector<1x8x64xf32> to vector<8x64xf32>
    %214 = vector.shape_cast %211 : vector<8x64xf32> to vector<1x8x64xf32>
    tpu.vector_store %arg10[%c0_97, %c0_98, %c0_99], %214 {strides = array<i32>} : memref<1x8x64xf32, #tpu.memory_space<vmem>>, vector<1x8x64xf32>,
    return
  }
  func.func @transform_0(%arg0: i32) -> (i32, i32) {
    %c0_i32 = arith.constant 0 : i32
    %c0_i32_0 = arith.constant 0 : i32
    %c0_i32_1 = arith.constant 0 : i32
    return %c0_i32, %c0_i32_0 : i32, i32
  }
  func.func @transform_1(%arg0: i32) -> (i32, i32) {
    %c0_i32 = arith.constant 0 : i32
    %c0_i32_0 = arith.constant 0 : i32
    %c0_i32_1 = arith.constant 0 : i32
    return %c0_i32, %c0_i32_0 : i32, i32
  }
  func.func @transform_2(%arg0: i32) -> (i32, i32, i32, i32) {
    %c0_i32 = arith.constant 0 : i32
    %c0_i32_0 = arith.constant 0 : i32
    %c0_i32_1 = arith.constant 0 : i32
    %c0_i32_2 = arith.constant 0 : i32
    return %arg0, %c0_i32, %c0_i32_0, %c0_i32_1 : i32, i32, i32, i32
  }
  func.func @transform_3(%arg0: i32) -> (i32, i32) {
    %c0_i32 = arith.constant 0 : i32
    %c0_i32_0 = arith.constant 0 : i32
    %c0_i32_1 = arith.constant 0 : i32
    return %c0_i32, %c0_i32_0 : i32, i32
  }
  func.func @transform_4(%arg0: i32) -> (i32, i32) {
    %c0_i32 = arith.constant 0 : i32
    %c0_i32_0 = arith.constant 0 : i32
    %c0_i32_1 = arith.constant 0 : i32
    return %c0_i32, %c0_i32_0 : i32, i32
  }
  func.func @transform_5(%arg0: i32) -> (i32, i32) {
    %c0_i32 = arith.constant 0 : i32
    %c0_i32_0 = arith.constant 0 : i32
    %c0_i32_1 = arith.constant 0 : i32
    return %c0_i32, %c0_i32_0 : i32, i32
  }
  func.func @transform_6(%arg0: i32) -> (i32, i32) {
    %c0_i32 = arith.constant 0 : i32
    %c0_i32_0 = arith.constant 0 : i32
    %c0_i32_1 = arith.constant 0 : i32
    return %c0_i32, %c0_i32_0 : i32, i32
  }
  func.func @transform_7(%arg0: i32) -> (i32, i32) {
    %c0_i32 = arith.constant 0 : i32
    %c0_i32_0 = arith.constant 0 : i32
    %c0_i32_1 = arith.constant 0 : i32
    return %c0_i32, %c0_i32_0 : i32, i32
  }
  func.func @transform_8(%arg0: i32) -> (i32, i32) {
    %c0_i32 = arith.constant 0 : i32
    %c0_i32_0 = arith.constant 0 : i32
    %c0_i32_1 = arith.constant 0 : i32
    return %c0_i32, %c0_i32_0 : i32, i32
  }
  func.func @transform_9(%arg0: i32) -> (i32, i32, i32) {
    %c0_i32 = arith.constant 0 : i32
    %c0_i32_0 = arith.constant 0 : i32
    %c0_i32_1 = arith.constant 0 : i32
    return %arg0, %c0_i32, %c0_i32_0 : i32, i32, i32
  }
}

</mosaic_0001>

<bundles_post_ra>
// kernel: tpu_custom_call.1
= control target key start
LH: loop header
LB: loop body
LE: loop exit
PB: predicated region body
PF: predicated region fallthrough
CT: control target
= control target key end

     0   :  { %s1580_s0 = inlined_call_operand.<no memory space> [shape: f32[1,1], index: 0, kind: input, shape index: {}]   ;;  %s1581_s1 = inlined_call_operand.<no memory space> [shape: f32[1,1], index: 1, kind: input, shape index: {}]   ;;  %s1582_s2 = inlined_call_operand.hbm [shape: f32[2,4,4,64], index: 2, kind: input, shape index: {}]   ;;  %s1583_s3 = inlined_call_operand.vmem [shape: f32[9,64], index: 3, kind: input, shape index: {}]   ;;  %s1584_s4 = inlined_call_operand.hbm [shape: f32[9,64], index: 4, kind: input, shape index: {}]   ;;  %s1585_s5 = inlined_call_operand.hbm [shape: f32[8,36], index: 5, kind: input, shape index: {}]   ;;  %s1586_s6 = inlined_call_operand.vmem [shape: f32[8,1], index: 6, kind: input, shape index: {}]   ;;  %s1587_s7 = inlined_call_operand.hbm [shape: f32[8,72], index: 7, kind: input, shape index: {}]   ;;  %s1588_s8 = inlined_call_operand.vmem [shape: f32[8,1], index: 8, kind: input, shape index: {}]   ;;  %s1589_s9 = inlined_call_operand.hbm [shape: f32[2,8,64], index: 9, kind: output, shape index: {}]  }
   0x1   :  { %1591 = sst [smem:[#allocation17_spill]] %s1584_s4 }
   0x2   :  { %14 = sst [smem:[#allocation2]] %s1580_s0 }
   0x3   :  { %15 = sst [smem:[#allocation3]] %s1581_s1 }
   0x4   :  { %16 = vsyncpa [#allocation5], 0 }
   0x5   :  { %18 = vsyncpa [#allocation5 + $0x1], 0 }
   0x6   :  { %19 = vsyncpa [#allocation8], 0 }
   0x7   :  { %20 = vsyncpa [#allocation11], 0 }
   0x8   :  { %21 = vsyncpa [#allocation6], 0 }
   0x9   :  { %23 = vsyncpa [#allocation6 + $0x1], 0  ;;  %s1267_s13 = smov 0   ;;  %s1269_s14 = smov 0  }
   0xa   :  { %s1271_s15 = smov 0   ;;  %s1273_s16 = smov 0  }
   0xb LB: > { %s1288_s0 = sadd.s32 4294967295, %s1185_s16   ;;  %s837_s1 = sadd.s32 4294967294, %s1185_s16   ;;  %s1185_s16 = sphi %s1273_s16, %s1616_s16   ;;  %s1181_s15 = sphi %s1271_s15, %s1615_s15   ;;  %s1177_s14 = sphi %s1269_s14, %s1614_s14   ;;  %s1173_s13 = sphi %s1267_s13, %s1613_s13  }
   0xc   : > { %p91_p0 = scmp.ne.s32.totalorder %s1177_s14, %s1173_s13  ;;  %p92_p1 = scmp.eq.s32.totalorder %s1288_s0, 0 }
   0xd   : > { %p241_p2 = scmp.eq.s32.totalorder %s1288_s0, 1  ;;  %p247_p3 = scmp.eq.s32.totalorder %s837_s1, 1 }
   0xe   : > { %p1297_p4 = por %p92_p1, %p91_p0  ;;  %p838_p5 = scmp.ge.s32.totalorder %s1185_s16, 1 }
   0xf   : > { %p1302_p6 = por %p247_p3, %p91_p0  ;;  %p254_p7 = scmp.lt.s32.totalorder %s1185_s16, 3 }
  0x10   : > { %s1594_s4 = sld [smem:[#allocation17_spill]]  ;;  %s1187_s23 = smov [#allocation7]  }
  0x11   : > { %p1310_p8 = pnand %p838_p5, %p254_p7  ;;  %s276_s24 = sshll.u32 %s1187_s23, 4  ;;  %s277_s24 = int_to_ptr.vmem [resolvable:$true] %s276_s24 }
  0x12   : > { %s289_s28 = sshll.u32 %s1585_s5, 4  ;;  %s1188_s29 = smov 128   ;;  %s290_s28 = int_to_ptr.hbm [resolvable:$true] %s289_s28 }
  0x13   : > { %p888_p9 = pneg %p1310_p8  ;;  %s1189_s30 = smov 8  }
  0x14   : > { %s1190_s10 = smov [#allocation9]   ;;  %s304_s19 = sshll.u32 %s1587_s7, 4  ;;  %s305_s19 = int_to_ptr.hbm [resolvable:$true] %s304_s19 }
  0x15   : > { %p1318_p10 = pnand %p888_p9, %p92_p1  ;;  %s291_s11 = sshll.u32 %s1190_s10, 4  ;;  %s292_s11 = int_to_ptr.vmem [resolvable:$true] %s291_s11 }
  0x16   : > { %s274_s21 = sshll.u32 %s1594_s4, 4  ;;  %s1191_s20 = smov [#allocation10]   ;;  %s275_s21 = int_to_ptr.hbm [resolvable:$true] %s274_s21 }
  0x17   : > { %891 = dma.hbm_to_vmem [thread:$0]  (!%p1318_p10), %s275_s21, 256, %s277_s24, [#allocation8], %s1188_s29, %s1188_s29, %s1189_s30  }
  0x18   : > { %894 = dma.hbm_to_vmem [thread:$0]  (!%p1318_p10), %s290_s28, 128, %s292_s11, [#allocation8]  }
  0x19   : > { %s306_s23 = sshll.u32 %s1191_s20, 4  ;;  %s1334_s21 = sadd.s32 1, %s1185_s16   ;;  %s307_s23 = int_to_ptr.vmem [resolvable:$true] %s306_s23 }
  0x1a   : > { %897 = dma.hbm_to_vmem [thread:$0]  (!%p1318_p10), %s305_s19, 128, %s307_s23, [#allocation11]  }
  0x1b   : > { %s75_s24 = ssub.s32 %s1185_s16, %s1334_s21  ;;  %s78_s26 = sadd.s32 1, %s1181_s15 }
  0x1c   : > { %p76_p12 = scmp.eq.s32.totalorder %s75_s24, 0  ;;  %p85_p13 = scmp.ne.s32.totalorder %s1181_s15, %s1177_s14 }
  0x1d   : > { %p86_p0 = scmp.eq.s32.totalorder %s1185_s16, 0  ;;  %p909_p3 = scmp.lt.s32.totalorder %s1185_s16, 2 }
  0x1e   : > { %s1346_s27 = scalar_select %p76_p12, %s1181_s15, %s78_s26  }
  0x1f   : > { %p87_p5 = por %p86_p0, %p85_p13  ;;  %p1350_p7 = por %p241_p2, %p85_p13 }
  0x20   : > { %s320_s29 = sand.u32 1, %s1181_s15   ;;  %s871_s30 = sshll.u32 %s1185_s16, 4 }
  0x21   : > { %s843_s25 = sshll.u32 %s320_s29, 4  ;;  %s329_s12 = scalar_lea.hbm %s1582_s2, %s871_s30 }
  0x22   : > { %s330_s1 = sshll.u32 %s329_s12, 4  ;;  %s324_s19 = scalar_lea.vmem [#allocation4], %s843_s25  ;;  %s331_s1 = int_to_ptr.hbm [resolvable:$true] %s330_s1 }
  0x23   : > { %s332_s20 = sshll.u32 %s324_s19, 4  ;;  %p1361_p9 = pnand %p909_p3, %p87_p5  ;;  %s333_s20 = int_to_ptr.vmem [resolvable:$true] %s332_s20 }
  0x24   : > { %s321_s24 = scalar_lea.sflag [#allocation5], %s320_s29  ;;  %s1081_s26 = sshra.s32 %s331_s1, 4  ;;  %s1082_s26 = int_to_ptr.hbm [resolvable:$true] %s1081_s26 }
  0x25   : > { %s1083_s4 = scalar_lea.hbm %s1082_s26, 16  ;;  %p1085_p10 = pneg %p1361_p9 }
  0x26   : > { %p1084_p2 = scmp.ne.s32.totalorder %s1082_s26, %s1083_s4  ;;  %s1088_s10 = scalar_lea.hbm %s1582_s2, 32 }
  0x27   : > { %p1089_p0 = scmp.lt.s32.totalorder %s1082_s26, %s1582_s2  ;;  %p1090_p3 = scmp.lt.s32.totalorder %s1088_s10, %s1083_s4 }
  0x28   : > { %p1086_p12 = pnand %p1085_p10, %p1084_p2 }
  0x29   : > { %p1091_p5 = por %p1090_p3, %p1089_p0 }
  0x2a   : > { %p1087_p13 = pneg %p1086_p12 }
  0x2c   : > { %p1092_p11 = pnand %p1091_p5, %p1087_p13 }
  0x2e   : > { %1095 = shalt.err (!%p1092_p11)
}
  0x2f   : > { %s1192_s29 = smov 64   ;;  %s1193_s19 = smov 4  }
  0x30   : > { %901 = dma.hbm_to_vmem [thread:$0]  (!%p1361_p9), %s331_s1, 256, %s333_s20, %s321_s24, %s1192_s29, %s1192_s29, %s1193_s19  }
  0x31   : > { %344 = sbr.rel (%p1310_p8) target bundleno = 626 (0x272), region = 56  ;;  %s1378_s30 = sand.u32 (!%p1310_p8), 1, %s1177_s14  }
  0x32   : > { %s847_s25 = sshll.u32 (!%p1310_p8), %s1378_s30, 4  ;;  %s347_s26 = scalar_lea.sflag (!%p1310_p8), [#allocation5], %s1378_s30 }
  0x33   : > { %s1382_s4 = scalar_lea.vmem (!%p1310_p8), [#allocation4], %s847_s25 }
  0x36   : > { %1156 = dma.done.wait (%p1297_p4), %s347_s26, 256  }
  0x37   : > { %1158 = vsyncadd (%p1297_p4), %s347_s26, 4294967040 }
  0x38   : > { %1160 = dma.done.wait (%p92_p1), [#allocation8], 384  }
  0x39   : > { %1162 = vsyncadd (%p92_p1), [#allocation8], 4294966912 }
  0x3a   : > { %1164 = dma.done.wait (%p92_p1), [#allocation11], 128  }
  0x3b   : > { %1166 = vsyncadd (%p92_p1), [#allocation11], 4294967168  ;;  %s401_s22 = sld [smem:[#allocation2]]  ;;  %v853_v1 = vld [vmem:[%s1382_s4 + $0x8] sm:$0xf]  ;;  %s1590_s17 = smov 73  }
  0x3c   : > { %v854_v2 = vld [vmem:[%s1382_s4 + $0xc] sm:$0xf]  ;;  %v852_v3 = vld [vmem:[%s1382_s4 + $0x4] sm:$0xf]  ;;  %vm415_vm0 = vcmp.gt.f32.partialorder %v853_v1, 0.0  ;;  %s1195_s1 = smov 72  }
  0x3d   : > { %vm420_vm1 = vcmp.gt.f32.partialorder %v854_v2, 0.0  ;;  %vm410_vm2 = vcmp.gt.f32.partialorder %v852_v3, 0.0  ;;  %s1196_s20 = smov 65   ;;  %s1197_s23 = smov 9   ;;  %v512_v12 = vld [vmem:[%s1583_s3 + $0x8] sm:$0x1] }
  0x3e   : > { %s1198_s24 = smov 8   ;;  %s1199_s10 = smov 1   ;;  %vm513_vm3 = vcmp.ne.f32.partialorder %v512_v12, 0.0  ;;  %v1200_v13 = vmov 0   ;;  %vm530_vm4 = vcmask 1043456   ;;  %v536_v19 = vld [vmem:[%s1586_s6] sm:$0xff] }
  0x3f   : > { %990 = vset.pattern.permute.xlu0 %v1200_v13  ;;  %v514_v14 = vsel %vm513_vm3, 1, %v1200_v13  ;;  %v506_v17 = vld [vmem:[%s1583_s3 + $0x7] sm:$0x1]  ;;  %v487_v18 = vld [vmem:[%s1583_s3 + $0x5] sm:$0x1]  ;;  %vm445_vm3 = vcmask 64512  }
  0x40   : > { %v515_v15 = vperm.slane %v514_v14, 0  ;;  %vm507_vm6 = vcmp.ne.f32.partialorder %v506_v17, 0.0  ;;  %vm488_vm7 = vcmp.ne.f32.partialorder %v487_v18, 0.0  ;;  %v500_v20 = vld [vmem:[%s1583_s3 + $0x6] sm:$0x1]  ;;  %s1201_s25 = smov 121  }
  0x41   : > { %v1396_v0 = vstv %s401_s22  ;;  %v508_v21 = vsel %vm507_vm6, 1, %v1200_v13  ;;  %v489_v22 = vsel %vm488_vm7, 1, %v1200_v13  ;;  %v481_v23 = vld [vmem:[%s1583_s3 + $0x4] sm:$0x1]  ;;  %v475_v24 = vld [vmem:[%s1583_s3 + $0x3] sm:$0x1] }
  0x42   : > { %v416_v4 = vmul.f32 %v853_v1, %v1396_v0  ;;  %v421_v5 = vmul.f32 %v854_v2, %v1396_v0  ;;  %v411_v6 = vmul.f32 %v852_v3, %v1396_v0  ;;  %vm516_vm5 = vcmp.eq.s32.totalorder %v515_v15, 1  ;;  %v447_v26 = vld [vmem:[%s1583_s3 + $0x1] sm:$0x1]  ;;  %v460_v29 = vld [vmem:[%s1583_s3 + $0x2] sm:$0x1]  ;;  %s1202_s26 = smov 55  }
  0x43   : > { %vm501_vm8 = vcmp.ne.f32.partialorder %v500_v20, 0.0  ;;  %v509_v25 = vperm.slane %v508_v21, 0  ;;  %v490_v27 = vperm.slane %v489_v22, 0  ;;  %vm482_vm9 = vcmp.ne.f32.partialorder %v481_v23, 0.0  ;;  %v403_v32 = vld [vmem:[%s1382_s4] sm:$0xf] }
  0x44   : > { %v1404_v7 = vsel %vm415_vm0, %v853_v1, %v416_v4  ;;  %v422_v8 = vsel %vm420_vm1, %v854_v2, %v421_v5  ;;  %v1407_v10 = vsel %vm410_vm2, %v852_v3, %v411_v6  ;;  %vm476_vm10 = vcmp.ne.f32.partialorder %v475_v24, 0.0  ;;  %v432_v38 = vld [vmem:[%s1583_s3] sm:$0x1]  ;;  %v535_v22 = vld [vmem:[#allocation9] sm:$0xff]  ;;  %s402_s4 = sld [smem:[#allocation3]]  ;;  %s1203_s22 = smov 119  }
  0x45   : > { %v980_v9 = vpack.i.bf16 %v422_v8, %v1404_v7  ;;  %424 = vrot.lane.b32.xlu2 %v422_v8, %s1590_s17  ;;  %v970_v11 = vpack.i.bf16 %v1407_v10, %v422_v8  ;;  %v517_v16 = vsel %vm516_vm5, %v422_v8, 0.0  ;;  %v502_v28 = vsel %vm501_vm8, 1, %v1200_v13  ;;  %s1204_s11 = smov 63   ;;  %s1205_s17 = smov 56   ;;  %v683_v31 = vld [vmem:[#allocation7 + $0x8] sm:$0x1] }
  0x46   : > { %855 = vmatpush.msk.msra.mxu0 %vm530_vm4, %v517_v16  ;;  %vm448_vm11 = vcmp.ne.f32.partialorder %v447_v26, 0.0  ;;  %vm1449_vm12 = vcmp.eq.s32.totalorder %v509_v25, 1  ;;  %v483_v34 = vsel %vm482_vm9, 1, %v1200_v13  ;;  %vm1455_vm13 = vcmp.eq.s32.totalorder %v490_v27, 1  ;;  %s1206_s12 = smov 120   ;;  %s1207_s29 = smov 71  }
  0x47   : > { %981 = vrot.lane.b32.xlu1 %v980_v9, %s1195_s1  ;;  %971 = vrot.lane.b32.xlu0 %v970_v11, %s1196_s20  ;;  %v477_v36 = vsel %vm476_vm10, 1, %v1200_v13  ;;  %v503_v37 = vperm.slane %v502_v28, 0  ;;  %vm461_vm14 = vcmp.ne.f32.partialorder %v460_v29, 0.0  ;;  %v449_v39 = vsel %vm448_vm11, 1, %v1200_v13  ;;  %s1208_s19 = smov 127  }
  0x48   : > { %v511_v41 = vsel %vm1449_vm12, %v1404_v7, 0.0  ;;  %v406_v42 = vmul.f32 %v1396_v0, %v403_v32  ;;  %vm404_vm15 = vcmp.gt.f32.partialorder %v403_v32, 0.0  ;;  %v484_v43 = vperm.slane %v483_v34, 0  ;;  %v669_v34 = vld [vmem:[#allocation7 + $0x7] sm:$0x1] }
  0x49   : > { %v492_v44 = vsel %vm1455_vm13, %v1407_v10, 0.0  ;;  %v478_v45 = vperm.slane %v477_v36, 0  ;;  %v462_v46 = vsel %vm461_vm14, 1, %v1200_v13  ;;  %vm433_vm0 = vcmp.ne.f32.partialorder %v432_v38, 0.0 }
  0x4a   : > { %v450_v47 = vperm.slane %v449_v39, 0  ;;  %vm473_vm1 = vcmask 7168   ;;  %vm1472_vm2 = vcmp.eq.s32.totalorder %v503_v37, 1  ;;  %v528_v49 = vrot.slane %v511_v41, 4  ;;  %v655_v41 = vld [vmem:[#allocation7 + $0x6] sm:$0x1] }
  0x4b   : > { %v407_v50 = vsel %vm404_vm15, %v403_v32, %v406_v42  ;;  %v525_v51 = vrot.slane %v492_v44, 4  ;;  %vm1476_vm5 = vcmp.eq.s32.totalorder %v484_v43, 1  ;;  %v463_v54 = vperm.slane %v462_v46, 0  ;;  %v641_v43 = vld [vmem:[#allocation7 + $0x5] sm:$0x1] }
  0x4c   : > { %vm1480_vm6 = vcmp.eq.s32.totalorder %v478_v45, 1  ;;  %v434_v56 = vsel %vm433_vm0, 1, %v1200_v13  ;;  %vm1485_vm7 = vcmp.eq.s32.totalorder %v450_v47, 1  ;;  %vm430_vm8 = vcmask 72704   ;;  %v627_v44 = vld [vmem:[#allocation7 + $0x4] sm:$0x1] }
  0x4d   : > { %427 = vrot.lane.b32.xlu2 %v422_v8, %s1197_s23  ;;  %v486_v2 = vsel %vm1476_vm5, %v407_v50, 0.0  ;;  %v435_v7 = vperm.slane %v434_v56, 0  ;;  %vm464_vm9 = vcmp.eq.s32.totalorder %v463_v54, 1  ;;  %vm542_vm11 = vcmask 293888   ;;  %v621_v50 = vld [vmem:[#allocation7 + $0x3] sm:$0x1] }
  0x4e   : > { %v533_v14 = vsel %vm530_vm4, %v486_v2, %v525_v51  ;;  %v570_v26 = vstv %s402_s4  ;;  %s1209_s4 = smov 57   ;;  %vm670_vm13 = vcmp.ne.f32.partialorder %v669_v34, 0.0  ;;  %vm681_vm14 = vcmask 449536  }
  0x4f   : > { %986 = vrot.lane.b32.xlu1 %v980_v9, %s1198_s24  ;;  %976 = vrot.lane.b32.xlu0 %v970_v11, %s1199_s10  ;;  %vm436_vm10 = vcmp.eq.s32.totalorder %v435_v7, 1  ;;  %v671_v38 = vsel %vm670_vm13, 1, %v1200_v13  ;;  %vm656_vm0 = vcmp.ne.f32.partialorder %v655_v41, 0.0 }
  0x50   : > { %v672_v42 = vperm.slane %v671_v38, 0  ;;  %v657_v46 = vsel %vm656_vm0, 1, %v1200_v13 }
  0x51   : > { %v658_v51 = vperm.slane %v657_v46, 0 }
  0x52   : > { %vm673_vm5 = vcmp.eq.s32.totalorder %v672_v42, 1 }
  0x57   : > { %539 = vperm.xlu0 %990, %v536_v19  }
  0x9f   : > { %v425_v40 = vpop.permute.xlu2 %424 }
  0xa7   : > { %v428_v8 = vpop.permute.xlu2 %427 }
  0xa8   : > { %v431_v17 = vsel %vm430_vm8, %v425_v40, %v428_v8 }
  0xa9   : > { %v437_v21 = vsel %vm436_vm10, %v431_v17, 0.0  ;;  %vm653_vm10 = vcmask 465920  }
  0xb9   : > { %v982_v30 = vpop.permute.xlu1 %981  ;;  %v972_v33 = vpop.permute.xlu0 %971 }
  0xba   : > { %v983_v57 = vunpack.i.l.bf16 %v982_v30  ;;  %v974_v58 = vunpack.i.h.bf16 %v972_v33  ;;  %v973_v62 = vunpack.i.l.bf16 %v972_v33  ;;  %v984_v4 = vunpack.i.h.bf16 %v982_v30  ;;  %v690_v30 = vld [vmem:[%s1588_s8] sm:$0xff] }
  0xc1   : > { %v987_v52 = vpop.permute.xlu1 %986  ;;  %v977_v60 = vpop.permute.xlu0 %976 }
  0xc2   : > { %v988_v59 = vunpack.i.l.bf16 %v987_v52  ;;  %v989_v63 = vunpack.i.h.bf16 %v987_v52  ;;  %v979_v0 = vunpack.i.h.bf16 %v977_v60  ;;  %v978_v1 = vunpack.i.l.bf16 %v977_v60 }
  0xc4   : > { %v446_v3 = vsel %vm445_vm3, %v983_v57, %v988_v59  ;;  %v499_v5 = vsel %vm473_vm1, %v973_v62, %v978_v1  ;;  %v474_v6 = vsel %vm473_vm1, %v974_v58, %v979_v0  ;;  %v459_v15 = vsel %vm445_vm3, %v984_v4, %v989_v63  ;;  %v608_v59 = vld [vmem:[#allocation7 + $0x2] sm:$0x1]  ;;  %v594_v63 = vld [vmem:[#allocation7 + $0x1] sm:$0x1] }
  0xc5   : > { %v505_v9 = vsel %vm1472_vm2, %v499_v5, 0.0  ;;  %v480_v10 = vsel %vm1480_vm6, %v474_v6, 0.0  ;;  %v452_v11 = vsel %vm1485_vm7, %v446_v3, 0.0  ;;  %v465_v19 = vsel %vm464_vm9, %v459_v15, 0.0  ;;  %v581_v5 = vld [vmem:[#allocation7] sm:$0x1] }
  0xc6   : > { %v534_v12 = vsel %vm530_vm4, %v505_v9, %v528_v49  ;;  %v522_v16 = vrot.slane %v480_v10, 4  ;;  %v519_v18 = vrot.slane %v452_v11, 4  ;;  %vm667_vm2 = vcmask 457728  }
  0xc7   : > { %561 = vmatpush.msra.mxu0 %v534_v12  ;;  %vm642_vm6 = vcmp.ne.f32.partialorder %v641_v43, 0.0  ;;  %vm628_vm7 = vcmp.ne.f32.partialorder %v627_v44, 0.0  ;;  %vm622_vm9 = vcmp.ne.f32.partialorder %v621_v50, 0.0  ;;  %vm595_vm0 = vcmp.ne.f32.partialorder %v594_v63, 0.0 }
  0xc8   : > { %v532_v20 = vsel %vm530_vm4, %v465_v19, %v522_v16  ;;  %v531_v23 = vsel %vm530_vm4, %v437_v21, %v519_v18  ;;  %vm684_vm4 = vcmp.ne.f32.partialorder %v683_v31, 0.0  ;;  %v643_v49 = vsel %vm642_vm6, 1, %v1200_v13  ;;  %v689_v18 = vld [vmem:[#allocation10] sm:$0xff] }
  0xc9   : > { %562 = vmatpush.msra.mxu0 %v533_v14  ;;  %v540_v24 = vpop.permute.xlu0 %539  ;;  %v685_v33 = vsel %vm684_vm4, 1, %v1200_v13  ;;  %v629_v53 = vsel %vm628_vm7, 1, %v1200_v13  ;;  %v644_v54 = vperm.slane %v643_v49, 0  ;;  %v623_v57 = vsel %vm622_vm9, 1, %v1200_v13 }
  0xca   : > { %v686_v35 = vperm.slane %v685_v33, 0  ;;  %v630_v55 = vperm.slane %v629_v53, 0  ;;  %v624_v61 = vperm.slane %v623_v57, 0  ;;  %v596_v4 = vsel %vm595_vm0, 1, %v1200_v13 }
  0xcb   : > { %563 = vmatpush.msra.mxu0 %v532_v20  ;;  %vm645_vm4 = vcmp.eq.s32.totalorder %v644_v54, 1  ;;  %v597_v7 = vperm.slane %v596_v4, 0  ;;  %vm696_vm9 = vcmask 588800  }
  0xcc   : > { %vm687_vm15 = vcmp.eq.s32.totalorder %v686_v35, 1  ;;  %vm631_vm13 = vcmp.eq.s32.totalorder %v630_v55, 1 }
  0xcd   : > { %564 = vmatpush.msra.mxu0 %v531_v23  ;;  %vm598_vm7 = vcmp.eq.s32.totalorder %v597_v7, 1 }
  0xce   : > { %856 = vmatmul.msk.f32.vlgmr.msra.gmra.mxu0 %vm542_vm11, %v535_v22  ;;  %vm659_vm11 = vcmp.eq.s32.totalorder %v658_v51, 1 }
 0x14b   : > { %v566_v25 = vpop.f32.mrf.mxu0 }
 0x14c   : > { %v567_v27 = vadd.f32 %v566_v25, %v540_v24 }
 0x14e   : > { %vm569_vm12 = vcmp.gt.f32.partialorder %v567_v27, 0.0  ;;  %v571_v28 = vmul.f32 %v570_v26, %v567_v27 }
 0x150   : > { %v1506_v29 = vsel %vm569_vm12, %v567_v27, %v571_v28  ;;  %vm639_vm12 = vcmask 515072  }
 0x151   : > { %647 = vrot.lane.b32.xlu0 %v1506_v29, %s1201_s25  ;;  %678 = vrot.lane.b32.xlu2 %v1506_v29, %s1202_s26 }
 0x152   : > { %675 = vrot.lane.b32.xlu1 %v1506_v29, %s1203_s22  ;;  %s1210_s22 = smov 7  }
 0x159   : > { %636 = vrot.lane.b32.xlu0 %v1506_v29, %s1204_s11  ;;  %664 = vrot.lane.b32.xlu2 %v1506_v29, %s1205_s17 }
 0x15a   : > { %661 = vrot.lane.b32.xlu1 %v1506_v29, %s1206_s12 }
 0x161   : > { %600 = vrot.lane.b32.xlu0 %v1506_v29, %s1207_s29  ;;  %633 = vrot.lane.b32.xlu2 %v1506_v29, %s1208_s19  ;;  %s723_s19 = scalar_lea.sflag [#allocation6], %s1378_s30 }
 0x162   : > { %650 = vrot.lane.b32.xlu1 %v1506_v29, %s1209_s4 }
 0x169   : > { %590 = vrot.lane.b32.xlu0 %v1506_v29, %s1198_s24  ;;  %617 = vrot.lane.b32.xlu2 %v1506_v29, %s1199_s10  ;;  %s1611_s24 = smov 73  }
 0x16a   : > { %614 = vrot.lane.b32.xlu1 %v1506_v29, %s1196_s20  ;;  %s868_s20 = sshll.u32 %s1288_s0, 3 }
 0x16b   : > { %s733_s11 = scalar_lea.hbm %s1589_s9, %s868_s20 }
 0x16c   : > { %s737_s29 = sshll.u32 %s733_s11, 4  ;;  %s738_s29 = int_to_ptr.hbm [resolvable:$true] %s737_s29 }
 0x16d   : > { %s1125_s4 = sshra.s32 %s738_s29, 4  ;;  %s1126_s4 = int_to_ptr.hbm [resolvable:$true] %s1125_s4 }
 0x16e   : > { %s1127_s25 = scalar_lea.hbm %s1126_s4, 8  ;;  %p1132_p11 = scmp.lt.s32.totalorder %s1126_s4, %s1589_s9 }
 0x16f   : > { %p1128_p1 = scmp.ne.s32.totalorder %s1126_s4, %s1127_s25 }
 0x171   : > { %693 = vperm.xlu0 %990, %v690_v30   ;;  %587 = vrot.lane.b32.xlu2 %v1506_v29, %s1195_s1  ;;  %s851_s1 = sshll.u32 %s1378_s30, 3  ;;  %p1129_p4 = pnand %p1128_p1, %p1350_p7 }
 0x172   : > { %603 = vrot.lane.b32.xlu1 %v1506_v29, %s1210_s22  ;;  %s400_s17 = scalar_lea.vmem [#allocation12], %s851_s1  ;;  %s1131_s22 = scalar_lea.hbm %s1589_s9, 16 }
 0x173   : > { %s735_s12 = sshll.u32 %s400_s17, 4  ;;  %p1130_p8 = pneg %p1129_p4  ;;  %s736_s12 = int_to_ptr.vmem [resolvable:$true] %s735_s12 }
 0x174   : > { %p1133_p9 = scmp.lt.s32.totalorder %s1131_s22, %s1127_s25 }
 0x176   : > { %p1134_p2 = por %p1133_p9, %p1132_p11 }
 0x178   : > { %p1135_p10 = pnand %p1134_p2, %p1130_p8 }
 0x179   : > { %577 = vrot.lane.b32.xlu2 %v1506_v29, %s1197_s23 }
 0x17a   : > { %574 = vrot.lane.b32.xlu1 %v1506_v29, %s1611_s24 }
 0x1ab   : > { %v679_v32 = vpop.permute.xlu2 %678 }
 0x1b3   : > { %v665_v36 = vpop.permute.xlu2 %664 }
 0x1bb   : > { %v634_v48 = vpop.permute.xlu2 %633 }
 0x1c3   : > { %v648_v40 = vpop.permute.xlu0 %647  ;;  %v618_v62 = vpop.permute.xlu2 %617 }
 0x1c4   : > { %v676_v37 = vpop.permute.xlu1 %675 }
 0x1c5   : > { %v682_v39 = vsel %vm681_vm14, %v676_v37, %v679_v32  ;;  %vm609_vm14 = vcmp.ne.f32.partialorder %v608_v59, 0.0 }
 0x1c6   : > { %857 = vmatpush.msk.msra.mxu1 %vm687_vm15, %v682_v39  ;;  %vm625_vm15 = vcmp.eq.s32.totalorder %v624_v61, 1  ;;  %v610_v2 = vsel %vm609_vm14, 1, %v1200_v13 }
 0x1c7   : > { %v611_v6 = vperm.slane %v610_v2, 0 }
 0x1c9   : > { %vm612_vm6 = vcmp.eq.s32.totalorder %v611_v6, 1 }
 0x1cb   : > { %v637_v52 = vpop.permute.xlu0 %636  ;;  %v588_v8 = vpop.permute.xlu2 %587 }
 0x1cc   : > { %v662_v45 = vpop.permute.xlu1 %661  ;;  %v640_v60 = vsel %vm639_vm12, %v634_v48, %v637_v52 }
 0x1cd   : > { %v668_v47 = vsel %vm667_vm2, %v662_v45, %v665_v36  ;;  %vm582_vm2 = vcmp.ne.f32.partialorder %v581_v5, 0.0 }
 0x1ce   : > { %858 = vmatpush.msk.msra.mxu1 %vm673_vm5, %v668_v47  ;;  %vm606_vm5 = vcmask 56320   ;;  %v583_v11 = vsel %vm582_vm2, 1, %v1200_v13 }
 0x1cf   : > { %v584_v15 = vperm.slane %v583_v11, 0 }
 0x1d3   : > { %v601_v0 = vpop.permute.xlu0 %600  ;;  %v578_v16 = vpop.permute.xlu2 %577 }
 0x1d4   : > { %v651_v56 = vpop.permute.xlu1 %650 }
 0x1d5   : > { %v654_v58 = vsel %vm653_vm10, %v648_v40, %v651_v56 }
 0x1d6   : > { %859 = vmatpush.msk.msra.mxu1 %vm659_vm11, %v654_v58 }
 0x1d8   : > { %860 = vmatpush.msk.msra.mxu1 %vm645_vm4, %v640_v60 }
 0x1da   : > { %861 = vmatpush.msk.msra.mxu1 %vm631_vm13, %v1506_v29 }
 0x1db   : > { %v591_v9 = vpop.permute.xlu0 %590 }
 0x1dc   : > { %v615_v1 = vpop.permute.xlu1 %614  ;;  %v593_v14 = vsel %vm445_vm3, %v588_v8, %v591_v9  ;;  %vm720_vm3 = vcmask 523264  }
 0x1dd   : > { %v620_v3 = vsel %vm473_vm1, %v615_v1, %v618_v62  ;;  %vm585_vm1 = vcmp.eq.s32.totalorder %v584_v15, 1 }
 0x1de   : > { %862 = vmatpush.msk.msra.mxu1 %vm625_vm15, %v620_v3 }
 0x1e3   : > { %v694_v13 = vpop.permute.xlu0 %693 }
 0x1e4   : > { %v604_v10 = vpop.permute.xlu1 %603 }
 0x1e5   : > { %v607_v12 = vsel %vm606_vm5, %v601_v0, %v604_v10 }
 0x1e6   : > { %863 = vmatpush.msk.msra.mxu1 %vm612_vm6, %v607_v12 }
 0x1e8   : > { %864 = vmatpush.msk.msra.mxu1 %vm598_vm7, %v593_v14 }
 0x1ec   : > { %v575_v17 = vpop.permute.xlu1 %574 }
 0x1ed   : > { %v580_v19 = vsel %vm430_vm8, %v575_v17, %v578_v16 }
 0x1ee   : > { %865 = vmatpush.msk.msra.mxu1 %vm585_vm1, %v580_v19 }
 0x1ef   : > { %866 = vmatmul.msk.f32.vlgmr.msra.gmra.mxu1 %vm696_vm9, %v689_v18 }
 0x26c   : > { %v717_v20 = vpop.f32.mrf.mxu1 }
 0x26d   : > { %v718_v21 = vadd.f32 %v717_v20, %v694_v13 }
 0x26f   : > { %721 = vst.msk [vmem:[%s400_s17] sm:$0xff] %vm720_vm3, %v718_v21 }
 0x270   : > { %1138 = shalt.err (!%p1135_p10)
}
 0x271   : > { %886 = dma.vmem_to_hbm [thread:$0]  (%p1350_p7), %s736_s12, 128, %s738_s29, %s723_s19  }
 0x272 PF: > { %s749_s30 = sand.u32 1, %s1173_s13   ;;  %p1612_p12 = scmp.ge.s32.totalorder %s1185_s16, 2 }
 0x273   : > { %s750_s20 = scalar_lea.sflag [#allocation6], %s749_s30 }
 0x274   : > { %p903_p13 = pnand %p1612_p12, %p1302_p6 }
 0x276   : > { %p904_p0 = pneg %p903_p13 }
 0x278   : > { %1168 = dma.done.wait (%p904_p0), %s750_s20, 128  }
 0x279   : > { %1170 = vsyncadd (%p904_p0), %s750_s20, 4294967168  ;;  %p26_p3 = scmp.ge.s32.totalorder %s1334_s21, 4   ;;  %s1613_s13 = smov %s1177_s14 }
 0x27a   : > { %s1614_s14 = smov %s1181_s15  ;;  %s1615_s15 = smov %s1346_s27 }
 0x27b   : > { %s1616_s16 = smov %s1334_s21  ;;  %28 = sbr.rel (!%p26_p3) target bundleno = 11 (0xb), region = 116 }
 0x280   :  { %756 = vsyncpa [#allocation5], 1 }
 0x281   :  { %758 = vsyncpa [#allocation5 + $0x1], 1 }
 0x282   :  { %759 = vsyncpa [#allocation8], 1 }
 0x283   :  { %760 = vsyncpa [#allocation11], 1 }
 0x284   :  { %761 = vsyncpa [#allocation6], 1 }
 0x285   :  { %763 = vsyncpa [#allocation6 + $0x1], 1 }

</bundles_post_ra>
